<compile_context>
chip_gen: v7x
topology: tpu7x:2x2x1
jax: 0.10.0
libtpu: 0.0.40
codegen_flags: <defaults>
</compile_context>

<pallas_src>
import jax
import jax.numpy as jnp
from jax.experimental import pallas as pl
from jax.experimental.pallas import tpu as pltpu

# ---- hyperparameters (Model(num_embedding, embedding_dim, attn_hidden, mlp_hidden)) ----
MAX_LOC = 5
MAX_VAR = 3
NUM_EMBEDDING = (5, 8, 4, 4)      # snp vocab, #positions (== seq len S), loc table, var table
EMBEDDING_DIM = (16, 16, 8, 8)    # E0 (== E1 so snp + pos adds), E2, E3
ATTN_HIDDEN = 32
MLP_HIDDEN = (32, 16, 32)
DEEP = MLP_HIDDEN[1]                      # fc2 width (16)
WIDE_HALF = MLP_HIDDEN[2] // 8            # each wide model output width (4)
WIDE = WIDE_HALF * 2                      # 8

B = 2
S = NUM_EMBEDDING[1]                      # seq length must equal num_embedding[1]
E = EMBEDDING_DIM[0]

LANES = 128                               # TPU lane width
SUB = 8                                   # TPU sublane tile
IDROWS = 2 * SUB                          # one-hot selector rows per batch (S seq + 1 samp + pad)

# ---- packed parameter slab layout: 272 rows x 128 lanes (~136 KiB f32) ----------------
# Block A (rows [0,128)) — shared RHS of 3 matmuls (one-hot gather, attn_fc1, attn_fc2):
#   rows [0,16)  cols [0,32)  : attn_fc1 weight (E x 32)
#   rows [0,32)  col  127     : attn_fc2 weight (32 x 1)
#   rows [32,37) cols [0,16)  : snp embedding table
#   rows [40,48) cols [0,16)  : positional embedding table
#   rows [48,54) cols [16,20) : folded sample-location wide model (one row per class)
#   rows [56,60) cols [20,24) : folded sample-variety wide model
# Block B (rows [128,256)) — shared RHS of fc2 and the merged wide&deep head:
#   rows [0,32)  cols [0,16)  : fc2 weight (32 x 16)
#   rows [0,24)  col  127     : merged wd_w (rows [0,16)=fc2 part, [16,20)=wm1, [20,24)=wm2)
# rows [256,264): fc1 weight (S x 32) — consumed by a sublane reduction, not the MXU
# rows [264,272): bias tile   — row 0 attn_b1, row 1 fc1_b, row 2 fc2_b, row 3 lane 0 wd_b
R_A = 0
R_B = 128
R_FC1 = 256
R_BIAS = 264
SLAB_ROWS = 272
# rows inside block A addressed by the one-hot selector lanes
R_EMB_SNP = 32
R_EMB_POS = 40
R_WIDE_LOC = 48
R_WIDE_VAR = 56
WCOL_LOC = DEEP                 # 16: wide lanes sit right after fc2's lanes (head merge)
WCOL_VAR = DEEP + WIDE_HALF     # 20
C_RES = 127                     # column holding attn_fc2 / head results


def model_kernel(ids_ref, slab_ref, out_ref):
    """One grid step == one batch element (S sequence rows)."""
    f32 = jnp.float32
    ids = ids_ref[...]                                    # (16, 2) selector lanes; -1 = pad

    # one-hot selector matrix: rows [0,S) -> snp+pos rows of block A, row S -> wide rows.
    lane16 = jax.lax.broadcasted_iota(jnp.int32, (IDROWS, LANES), 1)
    onehot = ((lane16 == ids[:, 0:1]) | (lane16 == ids[:, 1:2])).astype(f32)

    # fused gather on the MXU: rows [0,S) = x (cols [0,E)), row S = cat(wm1, wm2) (cols [16,24))
    xw = jnp.dot(onehot, slab_ref[R_A:R_A + LANES, :], preferred_element_type=f32)
    x_pad = xw[0:S, :]                                    # (S,128): cols [0,E)=x, rest exactly 0
    wide_row = xw[S:S + 1, :]                             # (1,128): cols [16,24), rest exactly 0

    bias = slab_ref[R_BIAS:R_BIAS + SUB, :]               # (8,128) aligned bias tile

    # attention: h = relu(x@W1 + b1); score = h@w2.  (attn_fc2 bias cancels in softmax.)
    # h lane 127 is junk (it multiplies the all-zero row 127 of block A downstream).
    h = jnp.maximum(
        jnp.dot(x_pad, slab_ref[R_A:R_A + LANES, :], preferred_element_type=f32)
        + bias[0:1, :], 0.0)                              # (S,128): lanes [0,32) valid
    scores = jnp.dot(h, slab_ref[R_A:R_A + LANES, :],
                     preferred_element_type=f32)[:, C_RES:C_RES + 1]       # (S,1)

    # softmax over the sequence dim (whole tile == one batch, no masking needed)
    m = jnp.max(scores, axis=0, keepdims=True)
    e = jnp.exp(scores - m)
    a_col = e / jnp.sum(e, axis=0, keepdims=True)         # (S,1)

    # context vector + AvgPool2d((1,E)) == mean over E  (relies on x_pad cols [E,128) == 0)
    pooled_col = jnp.sum(x_pad * a_col, axis=1, keepdims=True) * (1.0 / E)  # (S,1)

    # fc1: (1,S)@(S,32) done as a sublane reduction — avoids any transpose/reshape of pooled
    fc1 = jnp.maximum(
        jnp.sum(pooled_col * slab_ref[R_FC1:R_FC1 + S, :], axis=0, keepdims=True)
        + bias[1:2, :], 0.0)                              # (1,128): lanes [0,32) valid

    # fc2 and the merged wide&deep head share block B (head weight lives in col 127)
    fc2 = jnp.maximum(
        jnp.dot(fc1, slab_ref[R_B:R_B + LANES, :], preferred_element_type=f32)
        + bias[2:3, :], 0.0)                              # (1,128): lanes [0,16) valid
    head_in = fc2 + wide_row                              # lanes [0,24) = [fc2 | wm1 | wm2]
    res = (jnp.dot(head_in, slab_ref[R_B:R_B + LANES, :],
                   preferred_element_type=f32)[:, C_RES:C_RES + 1]
           + bias[3:4, 0:1])                              # (1,1)

    # single lane-dense full-tile store: cols [0,E)=x, col E=attention, col E+1=result
    lane_s = jax.lax.broadcasted_iota(jnp.int32, (S, LANES), 1)
    out_ref[...] = (x_pad
                    + a_col * (lane_s == E).astype(f32)
                    + res * (lane_s == E + 1).astype(f32))


def init_params(key):
    ks = jax.random.split(key, 16)
    n = jax.random.normal
    p = {}
    p["snp_table"] = n(ks[0], (NUM_EMBEDDING[0], EMBEDDING_DIM[0]), jnp.float32)
    p["pos_table"] = n(ks[1], (NUM_EMBEDDING[1], EMBEDDING_DIM[1]), jnp.float32)
    # attention (weights stored transposed: (in, out))
    p["attn_w1"] = n(ks[2], (EMBEDDING_DIM[0], ATTN_HIDDEN), jnp.float32)
    p["attn_b1"] = n(ks[3], (1, ATTN_HIDDEN), jnp.float32)
    gain = jnp.sqrt(2.0)  # relu gain, xavier-normal-ish scale
    p["attn_w2"] = gain * jnp.sqrt(2.0 / (ATTN_HIDDEN + 1)) * n(ks[4], (ATTN_HIDDEN, 1), jnp.float32)
    p["attn_b2"] = n(ks[5], (1, 1), jnp.float32)
    # deep MLP
    p["fc1_w"] = n(ks[6], (NUM_EMBEDDING[1], MLP_HIDDEN[0]), jnp.float32)
    p["fc1_b"] = n(ks[7], (1, MLP_HIDDEN[0]), jnp.float32)
    p["fc2_w"] = n(ks[8], (MLP_HIDDEN[0], MLP_HIDDEN[1]), jnp.float32)
    p["fc2_b"] = n(ks[9], (1, MLP_HIDDEN[1]), jnp.float32)
    # wide models
    p["loc_table"] = n(ks[10], (NUM_EMBEDDING[2], EMBEDDING_DIM[2]), jnp.float32)
    p["loc_w"] = 0.1 * n(ks[11], ((MAX_LOC + 1) * EMBEDDING_DIM[2], WIDE_HALF), jnp.float32)
    p["loc_b"] = 0.1 * n(ks[12], (1, WIDE_HALF), jnp.float32)
    p["var_table"] = n(ks[13], (NUM_EMBEDDING[3], EMBEDDING_DIM[3]), jnp.float32)
    p["var_w"] = 0.1 * n(ks[14], ((MAX_VAR + 1) * EMBEDDING_DIM[3], WIDE_HALF), jnp.float32)
    p["var_b"] = 0.1 * n(ks[15], (1, WIDE_HALF), jnp.float32)
    # wide+deep head
    kk = jax.random.split(ks[0], 2)
    p["wd_w"] = 0.1 * n(kk[0], (WIDE + DEEP, 1), jnp.float32)
    p["wd_b"] = 0.1 * n(kk[1], (1, 1), jnp.float32)
    return p


def pack_params(params):
    """Fold all parameters into one (272, 128) f32 slab. Run once per parameter set.
    Everything outside the explicitly-set ranges stays EXACTLY zero (kernel invariant)."""
    slab = jnp.zeros((SLAB_ROWS, LANES), jnp.float32)
    # ---- block A ----
    slab = slab.at[R_A:R_A + E, :ATTN_HIDDEN].set(params["attn_w1"])
    slab = slab.at[R_A:R_A + ATTN_HIDDEN, C_RES:C_RES + 1].set(params["attn_w2"])
    slab = slab.at[R_A + R_EMB_SNP:R_A + R_EMB_SNP + NUM_EMBEDDING[0], :E].set(params["snp_table"])
    slab = slab.at[R_A + R_EMB_POS:R_A + R_EMB_POS + S, :E].set(params["pos_table"])
    # folded wide models: one_hot -> Embedding(0/1 ids) -> flatten -> Linear(+bias), per class
    loc_cls = jnp.eye(MAX_LOC + 1, dtype=jnp.int32)
    loc_flat = jnp.take(params["loc_table"], loc_cls, axis=0).reshape(MAX_LOC + 1, -1)
    wide1 = loc_flat @ params["loc_w"] + params["loc_b"][0]               # (6, WIDE_HALF)
    var_cls = jnp.eye(MAX_VAR + 1, dtype=jnp.int32)
    var_flat = jnp.take(params["var_table"], var_cls, axis=0).reshape(MAX_VAR + 1, -1)
    wide2 = var_flat @ params["var_w"] + params["var_b"][0]               # (4, WIDE_HALF)
    slab = slab.at[R_A + R_WIDE_LOC:R_A + R_WIDE_LOC + MAX_LOC + 1,
                   WCOL_LOC:WCOL_LOC + WIDE_HALF].set(wide1)
    slab = slab.at[R_A + R_WIDE_VAR:R_A + R_WIDE_VAR + MAX_VAR + 1,
                   WCOL_VAR:WCOL_VAR + WIDE_HALF].set(wide2)
    # ---- block B (fc2 weight + merged wide&deep head in col 127) ----
    slab = slab.at[R_B:R_B + MLP_HIDDEN[0], :DEEP].set(params["fc2_w"])
    slab = slab.at[R_B:R_B + DEEP, C_RES:C_RES + 1].set(params["wd_w"][WIDE:])        # fc2 part
    slab = slab.at[R_B + DEEP:R_B + DEEP + WIDE_HALF,
                   C_RES:C_RES + 1].set(params["wd_w"][:WIDE_HALF])                    # wm1 part
    slab = slab.at[R_B + DEEP + WIDE_HALF:R_B + DEEP + WIDE,
                   C_RES:C_RES + 1].set(params["wd_w"][WIDE_HALF:WIDE])                # wm2 part
    # ---- fc1 rows + bias tile (attn_b2 intentionally dropped: cancels in softmax) ----
    slab = slab.at[R_FC1:R_FC1 + S, :MLP_HIDDEN[0]].set(params["fc1_w"])
    slab = slab.at[R_BIAS + 0, :ATTN_HIDDEN].set(params["attn_b1"][0])
    slab = slab.at[R_BIAS + 1, :MLP_HIDDEN[0]].set(params["fc1_b"][0])
    slab = slab.at[R_BIAS + 2, :DEEP].set(params["fc2_b"][0])
    slab = slab.at[R_BIAS + 3, 0].set(params["wd_b"][0, 0])
    return slab


@jax.jit
def model_forward(slab, snp, snp_pos, sample_loc, sample_variety):
    bsz = snp.shape[0]
    # one packed int32 selector buffer: rows [0,S)=[snp_lane,pos_lane], row S=[loc_lane,var_lane]
    seq_sel = jnp.stack([snp + R_EMB_SNP, snp_pos + R_EMB_POS], axis=-1)          # (B,S,2)
    samp_sel = jnp.stack([sample_loc + R_WIDE_LOC, sample_variety + R_WIDE_VAR],
                         axis=-1)[:, None, :]                                      # (B,1,2)
    pad = jnp.full((bsz, IDROWS - S - 1, 2), -1, jnp.int32)
    ids = jnp.concatenate(
        [seq_sel.astype(jnp.int32), samp_sel.astype(jnp.int32), pad],
        axis=1).reshape(bsz * IDROWS, 2)

    out = pl.pallas_call(
        model_kernel,
        out_shape=jax.ShapeDtypeStruct((bsz * S, LANES), jnp.float32),
        grid=(bsz,),
        in_specs=[pl.BlockSpec((IDROWS, 2), lambda i: (i, 0)),
                  pl.BlockSpec((SLAB_ROWS, LANES), lambda i: (0, 0))],   # resident slab
        out_specs=pl.BlockSpec((S, LANES), lambda i: (i, 0)),
        compiler_params=pltpu.CompilerParams(dimension_semantics=("parallel",)),
    )(ids, slab)

    o = out.reshape(bsz, S, LANES)
    x = o[:, :, :E]
    a = o[:, :, E]
    res = o[:, 0, E + 1]
    return x, a, res


def reference_forward(params, snp, snp_pos, sample_loc, sample_variety):
    x = jnp.take(params["snp_table"], snp, axis=0) + jnp.take(params["pos_table"], snp_pos, axis=0)
    h = jax.nn.relu(x @ params["attn_w1"] + params["attn_b1"][0])
    a = jax.nn.softmax((h @ params["attn_w2"] + params["attn_b2"][0]), axis=1)
    pooled = jnp.mean(x * a, axis=-1)
    fc1 = jax.nn.relu(pooled @ params["fc1_w"] + params["fc1_b"][0])
    fc2 = jax.nn.relu(fc1 @ params["fc2_w"] + params["fc2_b"][0])
    loc_oh = (jnp.arange(MAX_LOC + 1)[None, :] == sample_loc[:, None]).astype(jnp.int32)
    var_oh = (jnp.arange(MAX_VAR + 1)[None, :] == sample_variety[:, None]).astype(jnp.int32)
    loc_flat = jnp.take(params["loc_table"], loc_oh, axis=0).reshape(snp.shape[0], -1)
    var_flat = jnp.take(params["var_table"], var_oh, axis=0).reshape(snp.shape[0], -1)
    wm1 = loc_flat @ params["loc_w"] + params["loc_b"][0]
    wm2 = var_flat @ params["var_w"] + params["var_b"][0]
    wd = jnp.concatenate([wm1, wm2, fc2], axis=1)
    res = (wd @ params["wd_w"] + params["wd_b"][0]).reshape(snp.shape[0])
    return x, a[..., 0], res


if __name__ == "__main__":
    key = jax.random.PRNGKey(0)
    kp, k1, k2, k3, k4 = jax.random.split(key, 5)
    params = init_params(kp)
    slab = pack_params(params)          # one-time parameter preprocessing

    snp = jax.random.randint(k1, (B, S), 0, NUM_EMBEDDING[0], dtype=jnp.int32)
    snp_pos = jnp.tile(jnp.arange(S, dtype=jnp.int32)[None, :], (B, 1))
    sample_loc = jax.random.randint(k3, (B,), 0, MAX_LOC + 1, dtype=jnp.int32)
    sample_variety = jax.random.randint(k4, (B,), 0, MAX_VAR + 1, dtype=jnp.int32)

    x_out, a_out, res = model_forward(slab, snp, snp_pos, sample_loc, sample_variety)
    jax.block_until_ready((x_out, a_out, res))

    # correctness check against pure-JAX reference
    x_r, a_r, r_r = reference_forward(params, snp, snp_pos, sample_loc, sample_variety)
    assert jnp.allclose(x_out, x_r, atol=1e-4)
    assert jnp.allclose(a_out, a_r, atol=1e-4)
    assert jnp.allclose(res, r_r, atol=2e-3)

    print("KERNEL_OK")
</pallas_src>

<mosaic_0001>
module attributes {stable_mosaic.version = 11 : i64} {
  func.func @model_kernel(%arg0: i32, %arg1: memref<16x2xi32, #tpu.memory_space<vmem>>, %arg2: memref<272x128xf32, #tpu.memory_space<vmem>>, %arg3: memref<8x128xf32, #tpu.memory_space<vmem>>) attributes {dimension_semantics = [#tpu.dimension_semantics<parallel>], iteration_bounds = array<i64: 2>, scalar_prefetch = 0 : i64, scratch_operands = 0 : i64, tpu.core_type = #tpu.core_type<tc>, window_params = [{transform_indices = @transform_0, window_bounds = array<i64: 16, 2>}, {pipeline_mode = #tpu.pipeline_mode<synchronous>, transform_indices = @transform_1, window_bounds = array<i64: 272, 128>}, {transform_indices = @transform_2, window_bounds = array<i64: 8, 128>}]} {
    %c0 = arith.constant 0 : index
    %c0_0 = arith.constant 0 : index
    %0 = vector.load %arg1[%c0, %c0_0] : memref<16x2xi32, #tpu.memory_space<vmem>>, vector<16x2xi32>
    %1 = tpu.iota {dimensions = array<i32: 1>} : vector<16x128xi32>
    %2 = vector.extract_strided_slice %0 {offsets = [0, 0], sizes = [16, 1], strides = [1, 1]} : vector<16x2xi32> to vector<16x1xi32>
    %3 = vector.broadcast %2 : vector<16x1xi32> to vector<16x128xi32>
    %4 = arith.cmpi eq, %1, %3 : vector<16x128xi32>
    %5 = vector.extract_strided_slice %0 {offsets = [0, 1], sizes = [16, 1], strides = [1, 1]} : vector<16x2xi32> to vector<16x1xi32>
    %6 = vector.broadcast %5 : vector<16x1xi32> to vector<16x128xi32>
    %7 = arith.cmpi eq, %1, %6 : vector<16x128xi32>
    %8 = arith.ori %4, %7 : vector<16x128xi1>
    %9 = arith.extui %8 : vector<16x128xi1> to vector<16x128xi32>
    %10 = arith.sitofp %9 : vector<16x128xi32> to vector<16x128xf32>
    %c0_1 = arith.constant 0 : index
    %c0_2 = arith.constant 0 : index
    %11 = vector.load %arg2[%c0_1, %c0_2] : memref<272x128xf32, #tpu.memory_space<vmem>>, vector<128x128xf32>
    %cst = arith.constant dense<0.000000e+00> : vector<16x128xf32>
    %12 = tpu.matmul %10, %11, %cst {dimension_numbers = #tpu.dot_dimension_numbers<[1], [0], [0], [1], [0, 0, 1, 1], [], []>} : vector<16x128xf32>, vector<128x128xf32>, vector<16x128xf32> -> vector<16x128xf32>
    %13 = vector.extract_strided_slice %12 {offsets = [0, 0], sizes = [8, 128], strides = [1, 1]} : vector<16x128xf32> to vector<8x128xf32>
    %14 = vector.extract_strided_slice %12 {offsets = [8, 0], sizes = [1, 128], strides = [1, 1]} : vector<16x128xf32> to vector<1x128xf32>
    %c264 = arith.constant 264 : index
    %c0_3 = arith.constant 0 : index
    %15 = vector.load %arg2[%c264, %c0_3] : memref<272x128xf32, #tpu.memory_space<vmem>>, vector<8x128xf32>
    %c0_4 = arith.constant 0 : index
    %c0_5 = arith.constant 0 : index
    %16 = vector.load %arg2[%c0_4, %c0_5] : memref<272x128xf32, #tpu.memory_space<vmem>>, vector<128x128xf32>
    %cst_6 = arith.constant dense<0.000000e+00> : vector<8x128xf32>
    %17 = tpu.matmul %13, %16, %cst_6 {dimension_numbers = #tpu.dot_dimension_numbers<[1], [0], [0], [1], [0, 0, 1, 1], [], []>} : vector<8x128xf32>, vector<128x128xf32>, vector<8x128xf32> -> vector<8x128xf32>
    %18 = vector.extract_strided_slice %15 {offsets = [0, 0], sizes = [1, 128], strides = [1, 1]} : vector<8x128xf32> to vector<1x128xf32>
    %19 = vector.broadcast %18 : vector<1x128xf32> to vector<8x128xf32>
    %20 = arith.addf %17, %19 : vector<8x128xf32>
    %cst_7 = arith.constant 0.000000e+00 : f32
    %21 = vector.broadcast %cst_7 : f32 to vector<8x128xf32>
    %22 = arith.maximumf %20, %21 : vector<8x128xf32>
    %c0_8 = arith.constant 0 : index
    %c0_9 = arith.constant 0 : index
    %23 = vector.load %arg2[%c0_8, %c0_9] : memref<272x128xf32, #tpu.memory_space<vmem>>, vector<128x128xf32>
    %cst_10 = arith.constant dense<0.000000e+00> : vector<8x128xf32>
    %24 = tpu.matmul %22, %23, %cst_10 {dimension_numbers = #tpu.dot_dimension_numbers<[1], [0], [0], [1], [0, 0, 1, 1], [], []>} : vector<8x128xf32>, vector<128x128xf32>, vector<8x128xf32> -> vector<8x128xf32>
    %25 = vector.extract_strided_slice %24 {offsets = [0, 127], sizes = [8, 1], strides = [1, 1]} : vector<8x128xf32> to vector<8x1xf32>
    %cst_11 = arith.constant dense<0xFF800000> : vector<1xf32>
    %26 = vector.multi_reduction <maximumf>, %25, %cst_11 [0] : vector<8x1xf32> to vector<1xf32>
    %27 = vector.shape_cast %26 : vector<1xf32> to vector<1x1xf32>
    %28 = vector.broadcast %27 : vector<1x1xf32> to vector<8x1xf32>
    %29 = arith.subf %25, %28 : vector<8x1xf32>
    %30 = math.exp %29 : vector<8x1xf32>
    %cst_12 = arith.constant dense<0.000000e+00> : vector<1xf32>
    %31 = vector.multi_reduction <add>, %30, %cst_12 [0] : vector<8x1xf32> to vector<1xf32>
    %32 = vector.shape_cast %31 : vector<1xf32> to vector<1x1xf32>
    %33 = vector.broadcast %32 : vector<1x1xf32> to vector<8x1xf32>
    %34 = arith.divf %30, %33 : vector<8x1xf32>
    %35 = vector.broadcast %34 : vector<8x1xf32> to vector<8x128xf32>
    %36 = arith.mulf %13, %35 : vector<8x128xf32>
    %cst_13 = arith.constant dense<0.000000e+00> : vector<8xf32>
    %37 = vector.multi_reduction <add>, %36, %cst_13 [1] : vector<8x128xf32> to vector<8xf32>
    %38 = vector.shape_cast %37 : vector<8xf32> to vector<8x1xf32>
    %cst_14 = arith.constant 6.250000e-02 : f32
    %39 = vector.broadcast %cst_14 : f32 to vector<8x1xf32>
    %40 = arith.mulf %38, %39 : vector<8x1xf32>
    %c256 = arith.constant 256 : index
    %c0_15 = arith.constant 0 : index
    %41 = vector.load %arg2[%c256, %c0_15] : memref<272x128xf32, #tpu.memory_space<vmem>>, vector<8x128xf32>
    %42 = vector.broadcast %40 : vector<8x1xf32> to vector<8x128xf32>
    %43 = arith.mulf %42, %41 : vector<8x128xf32>
    %cst_16 = arith.constant dense<0.000000e+00> : vector<128xf32>
    %44 = vector.multi_reduction <add>, %43, %cst_16 [0] : vector<8x128xf32> to vector<128xf32>
    %45 = vector.shape_cast %44 : vector<128xf32> to vector<1x128xf32>
    %46 = vector.extract_strided_slice %15 {offsets = [1, 0], sizes = [1, 128], strides = [1, 1]} : vector<8x128xf32> to vector<1x128xf32>
    %47 = arith.addf %45, %46 : vector<1x128xf32>
    %cst_17 = arith.constant 0.000000e+00 : f32
    %48 = vector.broadcast %cst_17 : f32 to vector<1x128xf32>
    %49 = arith.maximumf %47, %48 : vector<1x128xf32>
    %c128 = arith.constant 128 : index
    %c0_18 = arith.constant 0 : index
    %50 = vector.load %arg2[%c128, %c0_18] : memref<272x128xf32, #tpu.memory_space<vmem>>, vector<128x128xf32>
    %cst_19 = arith.constant dense<0.000000e+00> : vector<1x128xf32>
    %51 = tpu.matmul %49, %50, %cst_19 {dimension_numbers = #tpu.dot_dimension_numbers<[1], [0], [0], [1], [0, 0, 1, 1], [], []>} : vector<1x128xf32>, vector<128x128xf32>, vector<1x128xf32> -> vector<1x128xf32>
    %52 = vector.extract_strided_slice %15 {offsets = [2, 0], sizes = [1, 128], strides = [1, 1]} : vector<8x128xf32> to vector<1x128xf32>
    %53 = arith.addf %51, %52 : vector<1x128xf32>
    %cst_20 = arith.constant 0.000000e+00 : f32
    %54 = vector.broadcast %cst_20 : f32 to vector<1x128xf32>
    %55 = arith.maximumf %53, %54 : vector<1x128xf32>
    %56 = arith.addf %55, %14 : vector<1x128xf32>
    %c128_21 = arith.constant 128 : index
    %c0_22 = arith.constant 0 : index
    %57 = vector.load %arg2[%c128_21, %c0_22] : memref<272x128xf32, #tpu.memory_space<vmem>>, vector<128x128xf32>
    %cst_23 = arith.constant dense<0.000000e+00> : vector<1x128xf32>
    %58 = tpu.matmul %56, %57, %cst_23 {dimension_numbers = #tpu.dot_dimension_numbers<[1], [0], [0], [1], [0, 0, 1, 1], [], []>} : vector<1x128xf32>, vector<128x128xf32>, vector<1x128xf32> -> vector<1x128xf32>
    %59 = vector.extract_strided_slice %58 {offsets = [0, 127], sizes = [1, 1], strides = [1, 1]} : vector<1x128xf32> to vector<1x1xf32>
    %60 = vector.extract_strided_slice %15 {offsets = [3, 0], sizes = [1, 1], strides = [1, 1]} : vector<8x128xf32> to vector<1x1xf32>
    %61 = arith.addf %59, %60 : vector<1x1xf32>
    %62 = tpu.iota {dimensions = array<i32: 1>} : vector<8x128xi32>
    %c16_i32 = arith.constant 16 : i32
    %63 = vector.broadcast %c16_i32 : i32 to vector<8x128xi32>
    %64 = arith.cmpi eq, %62, %63 : vector<8x128xi32>
    %65 = arith.extui %64 : vector<8x128xi1> to vector<8x128xi32>
    %66 = arith.sitofp %65 : vector<8x128xi32> to vector<8x128xf32>
    %67 = vector.broadcast %34 : vector<8x1xf32> to vector<8x128xf32>
    %68 = arith.mulf %67, %66 : vector<8x128xf32>
    %69 = arith.addf %13, %68 : vector<8x128xf32>
    %c17_i32 = arith.constant 17 : i32
    %70 = vector.broadcast %c17_i32 : i32 to vector<8x128xi32>
    %71 = arith.cmpi eq, %62, %70 : vector<8x128xi32>
    %72 = arith.extui %71 : vector<8x128xi1> to vector<8x128xi32>
    %73 = arith.sitofp %72 : vector<8x128xi32> to vector<8x128xf32>
    %74 = vector.broadcast %61 : vector<1x1xf32> to vector<8x128xf32>
    %75 = arith.mulf %74, %73 : vector<8x128xf32>
    %76 = arith.addf %69, %75 : vector<8x128xf32>
    %c0_24 = arith.constant 0 : index
    %c0_25 = arith.constant 0 : index
    %77 = vector.load %arg3[%c0_24, %c0_25] : memref<8x128xf32, #tpu.memory_space<vmem>>, vector<8x128xf32>
    tpu.vector_store %arg3[%c0_24, %c0_25], %76 {strides = array<i32>} : memref<8x128xf32, #tpu.memory_space<vmem>>, vector<8x128xf32>,
    return
  }
  func.func @transform_0(%arg0: i32) -> (i32, i32) {
    %c0_i32 = arith.constant 0 : i32
    %c0_i32_0 = arith.constant 0 : i32
    return %arg0, %c0_i32 : i32, i32
  }
  func.func @transform_1(%arg0: i32) -> (i32, i32) {
    %c0_i32 = arith.constant 0 : i32
    %c0_i32_0 = arith.constant 0 : i32
    %c0_i32_1 = arith.constant 0 : i32
    return %c0_i32, %c0_i32_0 : i32, i32
  }
  func.func @transform_2(%arg0: i32) -> (i32, i32) {
    %c0_i32 = arith.constant 0 : i32
    %c0_i32_0 = arith.constant 0 : i32
    return %arg0, %c0_i32 : i32, i32
  }
}

</mosaic_0001>

<bundles_post_ra>
// kernel: model_forward.1
= control target key start
LH: loop header
LB: loop body
LE: loop exit
PB: predicated region body
PF: predicated region fallthrough
CT: control target
= control target key end

     0   :  { %7 = vsyncpa [#allocation3], 0  ;;  %s1228_s9 = smov 0   ;;  %s1371_s0 = inlined_call_operand.vmem [shape: s32[32,2], index: 0, kind: input, shape index: {}]   ;;  %s1372_s1 = inlined_call_operand.hbm [shape: f32[272,128], index: 1, kind: input, shape index: {}]   ;;  %s1373_s2 = inlined_call_operand.vmem [shape: f32[16,128], index: 2, kind: output, shape index: {}]  }
   0x1 LB: > { %s1234_s10 = sadd.s32 4294967295, %s1199_s9   ;;  %p714_p0 = scmp.ge.s32.totalorder %s1199_s9, 1  ;;  %s1199_s9 = sphi %s1228_s9, %s13_s9  }
   0x2   : > { %p91_p1 = scmp.lt.s32.totalorder %s1199_s9, 3  ;;  %s1201_s11 = smov [#allocation2]  }
   0x3   : > { %s103_s12 = sshll.u32 %s1201_s11, 4  ;;  %p1374_p3 = scmp.eq.s32.totalorder %s1234_s10, 0  ;;  %s104_s12 = int_to_ptr.vmem [resolvable:$true] %s103_s12 }
   0x4   : > { %p1238_p2 = pnand %p714_p0, %p91_p1  ;;  %s1161_s17 = scalar_lea.hbm %s1372_s1, 4352 }
   0x5   : > { %p1162_p6 = scmp.ne.s32.totalorder %s1372_s1, %s1161_s17  ;;  %p1168_p10 = scmp.lt.u32.totalorder %s1161_s17, %s1372_s1 }
   0x6   : > { %s1376_s13 = scalar_select %p1238_p2, 1, 0 }
   0x7   : > { %p1125_p4 = pneg %p1238_p2 }
   0x9   : > { %p1247_p5 = pnand %p1374_p3, %p1125_p4 }
   0xb   : > { %p1163_p7 = pneg %p1247_p5 }
   0xd   : > { %p1164_p8 = pnand %p1163_p7, %p1162_p6 }
   0xf   : > { %p1165_p9 = pneg %p1164_p8 }
  0x11   : > { %p1170_p11 = pnand %p1168_p10, %p1165_p9 }
  0x13   : > { %1173 = shalt.err (!%p1170_p11)
}
  0x14   : > { %s1174_s22 = scalar_lea.vmem %s104_s12, 4352  ;;  %p1182_p1 = scmp.lt.s32.totalorder %s104_s12, %s104_s12 }
  0x15   : > { %p1175_p12 = scmp.ne.s32.totalorder %s104_s12, %s1174_s22  ;;  %p1183_p4 = scmp.lt.s32.totalorder %s1174_s22, %s1174_s22 }
  0x17   : > { %p1177_p13 = pnand %p1175_p12, %p1163_p7  ;;  %p1184_p3 = por %p1183_p4, %p1182_p1 }
  0x19   : > { %p1178_p0 = pneg %p1177_p13 }
  0x1b   : > { %p1185_p2 = pnand %p1184_p3, %p1178_p0 }
  0x1d   : > { %1188 = shalt.err (!%p1185_p2)
}
  0x1e   : > { %s1202_s23 = smov 128   ;;  %s1203_s24 = smov 8  }
  0x1f   : > { %1128 = dma.hbm_to_vmem [thread:$0]  (!%p1247_p5), %s1372_s1, 4352, %s104_s12, [#allocation3], %s1202_s23, %s1202_s23, %s1203_s24  }
  0x20   : > { %p1378_p6 = scmp.ne.s32.totalorder %s1376_s13, 0 }
  0x21   : > { %p1379_p8 = scmp.eq.s32.totalorder (!%p1378_p6), %s1234_s10, 0 }
  0x22   : > { %128 = sbr.rel (%p1378_p6) target bundleno = 1778 (0x6f2), region = 28 }
  0x29   : > { %1194 = dma.done.wait (%p1379_p8), [#allocation3], 4352   ;;  %p1380_p7 = pmov %p1379_p8 }
  0x2a   : > { %s719_s27 = sshll.u32 %s1234_s10, 1  ;;  %v1204_v0 = vmov 0   ;;  %v185_v3 = vld [vmem:[#allocation2] sm:$0xff]  ;;  %v186_v4 = vld [vmem:[#allocation2 + $0x8] sm:$0xff]  ;;  %v187_v5 = vld [vmem:[#allocation2 + $0x10] sm:$0xff]  ;;  %v1205_v9 = vmov 1   ;;  %v161_v29 = vlaneseq }
  0x2b   : > { %1196 = vsyncadd (%p1380_p7), [#allocation3], 4294962944  ;;  %1153 = vset.pattern.permute.xlu1 %v1204_v0  ;;  %1151 = vset.pattern.permute.xlu0 %v1204_v0  ;;  %p150_p2 = scmp.lt.s32.totalorder %s719_s27, 3  ;;  %v188_v6 = vld [vmem:[#allocation2 + $0x18] sm:$0xff]  ;;  %v1277_v7 = vpack.c.bf16 %v186_v4, %v185_v3  ;;  %v189_v10 = vld [vmem:[#allocation2 + $0x20] sm:$0xff]  ;;  %v1206_v15 = vmov 0.0|0.0  }
  0x2c   : > { %v1280_v8 = vpack.c.bf16 %v188_v6, %v187_v5  ;;  %v190_v11 = vld [vmem:[#allocation2 + $0x28] sm:$0xff]  ;;  %v191_v13 = vld [vmem:[#allocation2 + $0x30] sm:$0xff]  ;;  %v192_v14 = vld [vmem:[#allocation2 + $0x38] sm:$0xff]  ;;  %1023 = vmatprep.subr.bf16.mxu1 %v1206_v15  ;;  %v1302_v32 = vand.u32 127, %v161_v29  ;;  %v1207_v35 = vmov 1.0   ;;  %vm1208_vm6 = vmmov 0  }
  0x2d   : > { %s1382_s27 = smov (!%p150_p2, %s719_s27), 3  ;;  %992 = vmatprep.subr.bf16.mxu0 %v1277_v7  ;;  %v1284_v12 = vpack.c.bf16 %v190_v11, %v189_v10  ;;  %v1003_v16 = vpack.c.bf16 %v192_v14, %v191_v13  ;;  %1025 = vmatpush3.bf16.msra.mxu1 %v1277_v7  ;;  %v193_v17 = vld [vmem:[#allocation2 + $0x40] sm:$0xff]  ;;  %v194_v18 = vld [vmem:[#allocation2 + $0x48] sm:$0xff]  ;;  %v195_v20 = vld [vmem:[#allocation2 + $0x50] sm:$0xff]  ;;  %v1209_v36 = vmov 0.0   ;;  %v278_v39 = vshrl.u32 %v161_v29, 7 }
  0x2e   : > { %s720_s28 = sshll.u32 %s1382_s27, 3  ;;  %994 = vmatpush3.bf16.msra.mxu0 %v1277_v7  ;;  %1026 = vmatprep.subr.bf16.mxu1 %v1206_v15  ;;  %v1007_v19 = vpack.c.bf16 %v194_v18, %v193_v17  ;;  %v196_v21 = vld [vmem:[#allocation2 + $0x58] sm:$0xff]  ;;  %v197_v23 = vld [vmem:[#allocation2 + $0x60] sm:$0xff]  ;;  %v198_v24 = vld [vmem:[#allocation2 + $0x68] sm:$0xff]  ;;  %v1210_v47 = vmov 127   ;;  %vm422_vm7 = vcmask 1048568  }
  0x2f   : > { %s153_s3 = scalar_lea.vmem %s1371_s0, %s720_s28  ;;  %996 = vmatprep.subr.bf16.mxu0 %v1280_v8  ;;  %v1011_v22 = vpack.c.bf16 %v196_v21, %v195_v20  ;;  %v1015_v25 = vpack.c.bf16 %v198_v24, %v197_v23  ;;  %v199_v26 = vld [vmem:[#allocation2 + $0x70] sm:$0xff]  ;;  %v200_v27 = vld [vmem:[#allocation2 + $0x78] sm:$0xff]  ;;  %883 = vmatprep.mubr.msk.f32.mxu1 %vm1208_vm6, %v1209_v36  ;;  %v279_v40 = vsub.s32 0, %v278_v39  ;;  %v1330_v41 = vld [vmem:[#allocation2 + $0x108] sm:$0xff]  ;;  %s1211_s4 = smov 127   ;;  %vm630_vm8 = vcmp.eq.s32.totalorder %v1302_v32, 16 }
  0x30   : > { %v160_v1 = vld [vmem:[%s153_s3 + $0x8] sm:$0xff]  ;;  %v159_v2 = vld [vmem:[%s153_s3] sm:$0xff]  ;;  %v1019_v28 = vpack.c.bf16 %v200_v27, %v199_v26  ;;  %v467_v17 = vld [vmem:[#allocation2 + $0xb0] sm:$0xff]  ;;  %s1212_s5 = smov 1   ;;  %p155_p3 = scmp.lt.s32.totalorder %s1234_s10, 1  ;;  %vm635_vm9 = vcmp.eq.s32.totalorder %v1302_v32, 17 }
  0x31   : > { %167 = vperm.xlu1 %1153, %v160_v1   ;;  %164 = vperm.xlu0 %1151, %v159_v2   ;;  %v280_v42 = vrot.slane %v1330_v41, %v279_v40  ;;  %v461_v5 = vld [vmem:[#allocation2 + $0x80] sm:$0xff]  ;;  %v462_v6 = vld [vmem:[#allocation2 + $0x88] sm:$0xff]  ;;  %v468_v18 = vld [vmem:[#allocation2 + $0xb8] sm:$0xff] }
  0x32   : > { %998 = vmatpush3.bf16.msra.mxu0 %v1280_v8  ;;  %1028 = vmatpush3.bf16.msra.mxu1 %v1280_v8  ;;  %v465_v11 = vld [vmem:[#allocation2 + $0xa0] sm:$0xff]  ;;  %v470_v21 = vld [vmem:[#allocation2 + $0xc8] sm:$0xff]  ;;  %v471_v23 = vld [vmem:[#allocation2 + $0xd0] sm:$0xff]  ;;  %s1384_s10 = smov (!%p155_p3, %s1234_s10), 1 }
  0x33   : > { %1000 = vmatprep.subr.bf16.mxu0 %v1284_v12  ;;  %1029 = vmatprep.subr.bf16.mxu1 %v1206_v15  ;;  %v469_v20 = vld [vmem:[#allocation2 + $0xc0] sm:$0xff]  ;;  %v472_v24 = vld [vmem:[#allocation2 + $0xd8] sm:$0xff]  ;;  %v474_v27 = vld [vmem:[#allocation2 + $0xe8] sm:$0xff]  ;;  %s721_s6 = sshll.u32 %s1384_s10, 3 }
  0x34   : > { %v473_v26 = vld [vmem:[#allocation2 + $0xe0] sm:$0xff]  ;;  %v475_v29 = vld [vmem:[#allocation2 + $0xf0] sm:$0xff]  ;;  %s158_s12 = scalar_lea.vmem %s1373_s2, %s721_s6 }
  0x35   : > { %1154 = vset.pattern.permute.xlu1 %v1205_v9  ;;  %1152 = vset.pattern.permute.xlu0 %v1205_v9  ;;  %v464_v9 = vld [vmem:[#allocation2 + $0x98] sm:$0xff] }
  0x36   : > { %175 = vperm.xlu1 %1154, %v160_v1   ;;  %172 = vperm.xlu0 %1152, %v159_v2  }
  0x37   : > { %1002 = vmatpush3.bf16.msra.mxu0 %v1284_v12  ;;  %1031 = vmatpush3.bf16.msra.mxu1 %v1284_v12 }
  0x38   : > { %1004 = vmatprep.subr.bf16.mxu0 %v1003_v16  ;;  %1032 = vmatprep.subr.bf16.mxu1 %v1206_v15 }
  0x3a   : > { %1155 = vset.pattern.permute.xlu1 %v1210_v47  ;;  %1156 = vset.pattern.permute.xlu0 %v1210_v47 }
  0x3b   : > { %1006 = vmatpush3.bf16.msra.mxu0 %v1003_v16  ;;  %1034 = vmatpush3.bf16.msra.mxu1 %v1003_v16 }
  0x3c   : > { %1008 = vmatprep.subr.bf16.mxu0 %v1007_v19  ;;  %1035 = vmatprep.subr.bf16.mxu1 %v1206_v15 }
  0x3f   : > { %1010 = vmatpush3.bf16.msra.mxu0 %v1007_v19  ;;  %1037 = vmatpush3.bf16.msra.mxu1 %v1007_v19 }
  0x40   : > { %1012 = vmatprep.subr.bf16.mxu0 %v1011_v22  ;;  %1038 = vmatprep.subr.bf16.mxu1 %v1206_v15 }
  0x43   : > { %1014 = vmatpush3.bf16.msra.mxu0 %v1011_v22  ;;  %1040 = vmatpush3.bf16.msra.mxu1 %v1011_v22 }
  0x44   : > { %1016 = vmatprep.subr.bf16.mxu0 %v1015_v25  ;;  %1041 = vmatprep.subr.bf16.mxu1 %v1206_v15 }
  0x47   : > { %1018 = vmatpush3.bf16.msra.mxu0 %v1015_v25  ;;  %1043 = vmatpush3.bf16.msra.mxu1 %v1015_v25 }
  0x48   : > { %1020 = vmatprep.subr.bf16.mxu0 %v1019_v28  ;;  %1044 = vmatprep.subr.bf16.mxu1 %v1206_v15 }
  0x4b   : > { %1022 = vmatpush3.bf16.msra.mxu0 %v1019_v28  ;;  %1046 = vmatpush3.bf16.msra.mxu1 %v1019_v28 }
  0x4c   : > { %1047 = vmatprep.subr.bf16.mxu0 %v1206_v15  ;;  %1071 = vmatprep.subr.bf16.mxu1 %v1206_v15 }
  0xb0   : > { %v165_v30 = vpop.permute.xlu0 %164  ;;  %v168_v31 = vpop.permute.xlu1 %167 }
  0xb1   : > { %vm170_vm0 = vcmp.eq.s32.totalorder %v1302_v32, %v168_v31  ;;  %vm169_vm3 = vcmp.eq.s32.totalorder %v1302_v32, %v165_v30  ;;  %v476_v30 = vld [vmem:[#allocation2 + $0xf8] sm:$0xff] }
  0xb2   : > { %v1093_v31 = vpack.c.bf16 %v476_v30, %v475_v29 }
  0xb5   : > { %v176_v33 = vpop.permute.xlu1 %175  ;;  %v173_v34 = vpop.permute.xlu0 %172 }
  0xb6   : > { %vm178_vm1 = vcmp.eq.s32.totalorder %v1302_v32, %v176_v33  ;;  %vm177_vm2 = vcmp.eq.s32.totalorder %v1302_v32, %v173_v34  ;;  %v451_v33 = vld [vmem:[#allocation2 + $0x100] sm:$0xff] }
  0xb7   : > { %vm180_vm4 = vmor %vm170_vm0, %vm178_vm1 }
  0xb8   : > { %vm179_vm5 = vmor %vm169_vm3, %vm177_vm2 }
  0xb9   : > { %848 = vmatprep.mubr.msk.f32.mxu0 %vm179_vm5, %v1207_v35 }
  0xba   : > { %849 = vmatmul.mubr.msk.f32.vlgmr.msra.gmra.mrb[0].mxu0 %vm180_vm4, %v1207_v35 }
  0xbb   : > { %1049 = vmatpush3.bf16.msra.mxu0 %v1277_v7  ;;  %918 = vmatprep.mubr.msk.f32.mxu0 %vm1208_vm6, %v1209_v36  ;;  %v463_v7 = vld [vmem:[#allocation2 + $0x90] sm:$0xff] }
  0xbc   : > { %1050 = vmatprep.subr.bf16.mxu0 %v1206_v15  ;;  %v1075_v10 = vpack.c.bf16 %v464_v9, %v463_v7 }
  0xbf   : > { %1052 = vmatpush3.bf16.msra.mxu0 %v1280_v8  ;;  %v1072_v8 = vpack.c.bf16 %v462_v6, %v461_v5 }
  0xc0   : > { %1053 = vmatprep.subr.bf16.mxu0 %v1206_v15 }
  0xc3   : > { %1055 = vmatpush3.bf16.msra.mxu0 %v1284_v12  ;;  %v466_v12 = vld [vmem:[#allocation2 + $0xa8] sm:$0xff] }
  0xc4   : > { %1056 = vmatprep.subr.bf16.mxu0 %v1206_v15  ;;  %v1078_v13 = vpack.c.bf16 %v466_v12, %v465_v11 }
  0xc7   : > { %1058 = vmatpush3.bf16.msra.mxu0 %v1003_v16 }
  0xc8   : > { %1059 = vmatprep.subr.bf16.mxu0 %v1206_v15 }
  0xcb   : > { %1061 = vmatpush3.bf16.msra.mxu0 %v1007_v19  ;;  %v1081_v19 = vpack.c.bf16 %v468_v18, %v467_v17 }
  0xcc   : > { %1062 = vmatprep.subr.bf16.mxu0 %v1206_v15 }
  0xcf   : > { %1064 = vmatpush3.bf16.msra.mxu0 %v1011_v22  ;;  %v1084_v22 = vpack.c.bf16 %v470_v21, %v469_v20 }
  0xd0   : > { %1065 = vmatprep.subr.bf16.mxu0 %v1206_v15 }
  0xd3   : > { %1067 = vmatpush3.bf16.msra.mxu0 %v1015_v25  ;;  %v1087_v25 = vpack.c.bf16 %v472_v24, %v471_v23 }
  0xd4   : > { %1068 = vmatprep.subr.bf16.mxu0 %v1206_v15 }
  0xd7   : > { %1070 = vmatpush3.bf16.msra.mxu0 %v1019_v28  ;;  %v1090_v28 = vpack.c.bf16 %v474_v27, %v473_v26 }
  0xd8   : > { %1095 = vmatprep.subr.bf16.mxu0 %v1206_v15 }
 0x18d   : > { %v1323_v37 = vpop.f32.mrb[0].mxu0 }
 0x18e   : > { %v1325_v38 = vpop.f32.mrb[1].mxu0 }
 0x18f   : > { %884 = vmatmul.mubr.f32.vlgmr.msra.gmra.mrb[0].mxu1 %v1325_v38 }
 0x190   : > { %953 = vmatprep.mubr.msk.f32.mxu1 %vm1208_vm6, %v1209_v36  ;;  %1073 = vmatpush3.bf16.msra.mxu1 %v1072_v8 }
 0x191   : > { %1074 = vmatprep.subr.bf16.mxu1 %v1206_v15 }
 0x194   : > { %1076 = vmatpush3.bf16.msra.mxu1 %v1075_v10 }
 0x195   : > { %1077 = vmatprep.subr.bf16.mxu1 %v1206_v15 }
 0x198   : > { %1079 = vmatpush3.bf16.msra.mxu1 %v1078_v13 }
 0x199   : > { %1080 = vmatprep.subr.bf16.mxu1 %v1206_v15 }
 0x19c   : > { %1082 = vmatpush3.bf16.msra.mxu1 %v1081_v19 }
 0x19d   : > { %1083 = vmatprep.subr.bf16.mxu1 %v1206_v15 }
 0x1a0   : > { %1085 = vmatpush3.bf16.msra.mxu1 %v1084_v22 }
 0x1a1   : > { %1086 = vmatprep.subr.bf16.mxu1 %v1206_v15 }
 0x1a4   : > { %1088 = vmatpush3.bf16.msra.mxu1 %v1087_v25 }
 0x1a5   : > { %1089 = vmatprep.subr.bf16.mxu1 %v1206_v15 }
 0x1a8   : > { %1091 = vmatpush3.bf16.msra.mxu1 %v1090_v28 }
 0x1a9   : > { %1092 = vmatprep.subr.bf16.mxu1 %v1206_v15 }
 0x1ac   : > { %1094 = vmatpush3.bf16.msra.mxu1 %v1093_v31 }
 0x262   : > { %v347_v43 = vpop.f32.mrb[0].mxu1 }
 0x263   : > { %v348_v44 = vadd.f32 %v347_v43, %v280_v42  ;;  %v885_v45 = vpop.f32.mrb[1].mxu1 }
 0x265   : > { %v351_v46 = vmax.f32 %v348_v44, 0.0 }
 0x267   : > { %919 = vmatmul.mubr.f32.vlgmr.msra.gmra.mrb[2].mxu0 %v351_v46 }
 0x268   : > { %988 = vmatprep.mubr.msk.f32.mxu0 %vm1208_vm6, %v1209_v36  ;;  %1097 = vmatpush3.bf16.msra.mxu0 %v1072_v8 }
 0x269   : > { %1098 = vmatprep.subr.bf16.mxu0 %v1206_v15 }
 0x26c   : > { %1100 = vmatpush3.bf16.msra.mxu0 %v1075_v10 }
 0x26d   : > { %1101 = vmatprep.subr.bf16.mxu0 %v1206_v15 }
 0x270   : > { %1103 = vmatpush3.bf16.msra.mxu0 %v1078_v13 }
 0x271   : > { %1104 = vmatprep.subr.bf16.mxu0 %v1206_v15 }
 0x274   : > { %1106 = vmatpush3.bf16.msra.mxu0 %v1081_v19 }
 0x275   : > { %1107 = vmatprep.subr.bf16.mxu0 %v1206_v15 }
 0x278   : > { %1109 = vmatpush3.bf16.msra.mxu0 %v1084_v22 }
 0x279   : > { %1110 = vmatprep.subr.bf16.mxu0 %v1206_v15 }
 0x27c   : > { %1112 = vmatpush3.bf16.msra.mxu0 %v1087_v25 }
 0x27d   : > { %1113 = vmatprep.subr.bf16.mxu0 %v1206_v15 }
 0x280   : > { %1115 = vmatpush3.bf16.msra.mxu0 %v1090_v28 }
 0x281   : > { %1116 = vmatprep.subr.bf16.mxu0 %v1206_v15  ;;  %v481_v15 = vrot.slane %v1330_v41, 2 }
 0x284   : > { %1118 = vmatpush3.bf16.msra.mxu0 %v1093_v31 }
 0x33a   : > { %v418_v48 = vpop.f32.mrb[2].mxu0 }
 0x33b   : > { %v423_v49 = vsel %vm422_vm7, %v418_v48, -inf  ;;  %v920_v50 = vpop.f32.mrb[3].mxu0 }
 0x33c   : > { %v424_v51 = vrot.slane %v423_v49, 4  ;;  %v625_v50 = vrot.slane %v1330_v41, 3 }
 0x33e   : > { %v425_v52 = vmax.f32 %v423_v49, %v424_v51 }
 0x340   : > { %v426_v53 = vrot.slane %v425_v52, 2 }
 0x342   : > { %v427_v54 = vmax.f32 %v425_v52, %v426_v53 }
 0x344   : > { %v428_v55 = vrot.slane %v427_v54, 1 }
 0x346   : > { %v429_v56 = vmax.f32 %v427_v54, %v428_v55 }
 0x348   : > { %v430_v57 = vsub.f32 %v418_v48, %v429_v56 }
 0x34a   : > { %v431_v58 = vmul.f32 1.442695, %v430_v57 }
 0x34c   : > { %1157 = vpow2.f32 %v431_v58 }
 0x356   : > { %v1158_v59 = vpop.eup %1157 }
 0x357   : > { %v433_v60 = vsel %vm422_vm7, %v1158_v59, 0.0 }
 0x358   : > { %v434_v61 = vrot.slane %v433_v60, 4 }
 0x35a   : > { %v435_v62 = vadd.f32 %v434_v61, %v433_v60 }
 0x35c   : > { %v436_v63 = vrot.slane %v435_v62, 2 }
 0x35e   : > { %v437_v0 = vadd.f32 %v436_v63, %v435_v62 }
 0x360   : > { %v438_v1 = vrot.slane %v437_v0, 1 }
 0x362   : > { %v439_v2 = vadd.f32 %v438_v1, %v437_v0 }
 0x364   : > { %1159 = vrcp.f32 %v439_v2 }
 0x36e   : > { %v1160_v3 = vpop.eup %1159 }
 0x36f   : > { %v441_v4 = vmul.f32 %v1160_v3, %v1158_v59 }
 0x371   : > { %444 = vperm.xlu1 %1155, %v441_v4  }
 0x375   : > { %626 = vrot.lane.b32.xlu1 %v625_v50, %s1211_s4 }
 0x3f0   : > { %v1341_v14 = vpop.permute.xlu1 %444 }
 0x3f1   : > { %v447_v16 = vmul.f32 %v1341_v14, %v1325_v38 }
 0x3f3   : > { %448 = vadd.xlane.f32.xlu0 %v447_v16 }
 0x3f4   : > { %v627_v56 = vpop.permute.xlu1 %626 }
 0x480   : > { %v449_v34 = vpop.xlane.xlu0 %448 }
 0x481   : > { %v450_v35 = vmul.f32 0.0625, %v449_v34 }
 0x483   : > { %v452_v39 = vmul.f32 %v451_v33, %v450_v35 }
 0x485   : > { %v453_v40 = vrot.slane %v452_v39, 4 }
 0x487   : > { %v454_v42 = vadd.f32 %v453_v40, %v452_v39 }
 0x489   : > { %v455_v43 = vrot.slane %v454_v42, 2 }
 0x48b   : > { %v456_v44 = vadd.f32 %v455_v43, %v454_v42 }
 0x48d   : > { %v457_v45 = vrot.slane %v456_v44, 1 }
 0x48f   : > { %v458_v46 = vadd.f32 %v457_v45, %v456_v44 }
 0x491   : > { %v459_v47 = vadd.f32 %v458_v46, %v1330_v41  ;;  %v726_v41 = vsel %vm630_vm8, 1.0, %v1209_v36 }
 0x492   : > { %v633_v61 = vmul.f32 %v726_v41, %v1341_v14 }
 0x493   : > { %v460_v48 = vmax.f32 %v459_v47, 0.0 }
 0x494   : > { %v634_v63 = vadd.f32 %v633_v61, %v1325_v38 }
 0x495   : > { %v478_v49 = vrot.slane %v460_v48, 1 }
 0x497   : > { %954 = vmatmul.mubr.f32.vlgmr.msra.gmra.mrb[2].mxu1 %v478_v49 }
 0x56a   : > { %v549_v51 = vpop.f32.mrb[2].mxu1 }
 0x56b   : > { %v550_v52 = vadd.f32 %v549_v51, %v481_v15  ;;  %v955_v53 = vpop.f32.mrb[3].mxu1 }
 0x56d   : > { %v553_v54 = vmax.f32 %v550_v52, 0.0 }
 0x56f   : > { %v554_v55 = vadd.f32 %v1323_v37, %v553_v54  ;;  %v727_v37 = vsel %vm635_vm9, 1.0, %v1209_v36 }
 0x571   : > { %989 = vmatmul.mubr.f32.vlgmr.msra.gmra.mrb[4].mxu0 %v554_v55 }
 0x644   : > { %v621_v57 = vpop.f32.mrb[4].mxu0 }
 0x645   : > { %v629_v58 = vadd.f32 %v627_v56, %v621_v57  ;;  %v990_v59 = vpop.f32.mrb[5].mxu0 }
 0x647   : > { %639 = vrot.lane.b32.xlu1 %v629_v58, %s1212_s5 }
 0x6b9   : > { %v640_v60 = vpop.permute.xlu1 %639 }
 0x6ba   : > { %1119 = vpush %v640_v60 }
 0x6eb   : > { %s1120_s7 = spop %1119 }
 0x6ec   : > { %v642_v62 = vstv %s1120_s7 }
 0x6ed   : > { %v644_v0 = vmul.f32 %v727_v37, %v642_v62 }
 0x6ef   : > { %v645_v1 = vadd.f32 %v644_v0, %v634_v63 }
 0x6f1   : > { %646 = vst [vmem:[%s158_s12] sm:$0xff] %v645_v1 }
 0x6f2 PF: > { %s13_s9 = sadd.s32 1, %s1199_s9  }
 0x6f3   : > { %p10_p5 = scmp.ge.s32.totalorder %s13_s9, 4  }
 0x6f5   :  { %12 = sbr.rel (!%p10_p5) target bundleno = 1 (0x1), region = 63 }
 0x6fc   :  { %666 = vsyncpa [#allocation3], 1 }
 0x6fd   :  { %668 = vsyncpa [#allocation3 + $0x1], 1 }

</bundles_post_ra>
